<compile_context>
chip_gen: v7x
topology: tpu7x:2x2x1
jax: 0.10.0
libtpu: 0.0.40
codegen_flags: <defaults>
</compile_context>

<pallas_src>
import functools

import jax
import jax.numpy as jnp
from jax.experimental import pallas as pl
from jax.experimental.pallas import tpu as pltpu


def _acol_loss_kernel(labels_ref, logits_a_ref, logits_b_ref, out_ref, *,
                      total_b, tile_b, use_mxu_rowsum):
    """Per-tile partial sum of CE(logits_a) + CE(logits_b) over valid rows."""
    i = pl.program_id(0)
    c = logits_a_ref.shape[-1]
    labels = labels_ref[...]                                     # (tile_b, 1) i32

    # Rows past the end of the batch (last, possibly partial tile).
    row_ids = i * tile_b + jax.lax.broadcasted_iota(jnp.int32, (tile_b, 1), 0)
    valid = row_ids < total_b                                    # (tile_b, 1) bool

    x_a = logits_a_ref[...]                                      # native dtype
    x_b = logits_b_ref[...]

    if use_mxu_rowsum:
        ones_c = jnp.ones((c, 128), jnp.bfloat16)                # tiny constant

    def lse_rows(x_native):
        # Row max on the native dtype (exact for bf16); only m and the exp
        # operand are promoted to f32.
        m = jnp.max(x_native, axis=-1, keepdims=True).astype(jnp.float32)
        p = jnp.exp(x_native.astype(jnp.float32) - m)            # (tile_b, c) f32
        if use_mxu_rowsum:
            # Route the row-sum through the idle MXU instead of the XLU.
            # hi/lo bf16 split keeps ~f32 accuracy (rel err ~2^-17).
            p_hi = p.astype(jnp.bfloat16)
            p_lo = (p - p_hi.astype(jnp.float32)).astype(jnp.bfloat16)
            s = (jnp.dot(p_hi, ones_c, preferred_element_type=jnp.float32)
                 + jnp.dot(p_lo, ones_c, preferred_element_type=jnp.float32))
            s = s[:, 0:1]                                        # (tile_b, 1)
        else:
            s = jnp.sum(p, axis=-1, keepdims=True)               # (tile_b, 1)
        return m + jnp.log(s)                                    # (tile_b, 1)

    lse = lse_rows(x_a) + lse_rows(x_b)                          # (tile_b, 1) f32
    # Masking stays a true select (never multiply-by-mask): garbage lse from
    # padded remainder rows is simply discarded.
    lse_sum = jnp.sum(jnp.where(valid, lse, 0.0))

    # Single fused picked-logit reduction for BOTH branches: one whole-block
    # 2-D reduce instead of two per-branch lane reductions.
    class_ids = jax.lax.broadcasted_iota(jnp.int32, (tile_b, c), 1)
    hit = jnp.logical_and(class_ids == labels, valid)            # (tile_b, c)
    xs = x_a.astype(jnp.float32) + x_b.astype(jnp.float32)
    picked_sum = jnp.sum(jnp.where(hit, xs, 0.0))

    tile_sum = (lse_sum - picked_sum).astype(jnp.float32)
    # Lane-dense (8,128) output block: unmasked store, per-tile disjoint, so
    # the batch grid axis can be "parallel".
    out_ref[...] = jnp.broadcast_to(tile_sum, out_ref.shape)


def _hw_params():
    """Generation-aware VMEM budget / scoped limit / minimum grid steps."""
    vmem_cap = 128 * 1024 * 1024
    try:
        info = pltpu.get_tpu_info()
        vmem_cap = int(getattr(info, "vmem_capacity_bytes", vmem_cap))
    except Exception:
        pass
    if vmem_cap <= 80 * 1024 * 1024:
        # v7x-class: 64 MiB VMEM per TensorCore, 2 TCs per chip -> smaller
        # budget, tighter scoped limit, and force >=2 grid steps.
        return dict(budget_bytes=14 * 1024 * 1024,
                    vmem_limit_bytes=min(32 * 1024 * 1024, vmem_cap // 2),
                    min_grid=2)
    # v5e / v6e (128 MiB VMEM, single TC): larger streaming tiles.
    return dict(budget_bytes=48 * 1024 * 1024,
                vmem_limit_bytes=min(100 * 1024 * 1024,
                                     vmem_cap - 28 * 1024 * 1024),
                min_grid=1)


def _sublane_multiple(itemsize):
    # f32 -> 8, bf16 -> 16, int8/fp8 -> 32 (native sublane tiling per dtype).
    return max(8, 32 // max(1, itemsize))


def _pick_tile_b(b, c, itemsize, budget_bytes, min_grid, max_tile=4096):
    """Largest batch tile whose streamed blocks + f32 temporaries fit budget."""
    c_pad = -(-c // 128) * 128
    sub = _sublane_multiple(itemsize)
    # 2 logits inputs x 2 pipeline buffers (native dtype) + ~3 f32 working
    # copies of the tile (per-branch f32 cast / exp / fused picked operand)
    # + 2 buffers of the lane-padded (tile,1)->(tile,128) i32 label block.
    per_row = 2 * 2 * c_pad * itemsize + 3 * c_pad * 4 + 2 * 128 * 4
    tile = budget_bytes // per_row
    if min_grid > 1:
        # Keep >=2 grid steps so both TensorCores get work, as long as each
        # step still streams >= ~1 MiB of logits (per-step overhead amortized).
        split = -(-b // min_grid)
        if 2 * split * c * itemsize >= (1 << 20):
            tile = min(tile, split)
    tile = min(tile, max_tile, b)
    if tile >= b:
        return b                                   # single full-extent block
    return max(sub, (tile // sub) * sub)


def acol_loss_pallas(logits_a, logits_b, glabel, *, tile_b=None):
    """ACoL loss: sum of two mean-reduced cross-entropies.

    logits_a, logits_b: [B, C] float arrays (branch A / branch B logits),
                        f32 or bf16 (bf16 is streamed directly, cast in-kernel).
    glabel:             [B]   int labels in [0, C).
    Returns a scalar f32.
    """
    assert logits_a.shape == logits_b.shape and logits_a.ndim == 2
    b, c = logits_a.shape
    itemsize = jnp.dtype(logits_a.dtype).itemsize
    hw = _hw_params()
    sub = _sublane_multiple(itemsize)
    if tile_b is None:
        tile_b = _pick_tile_b(b, c, itemsize, hw["budget_bytes"], hw["min_grid"])
    else:
        # Validate/round caller-supplied tile_b (sublane constraint).
        tile_b = min(int(tile_b), b)
        if tile_b < b:
            tile_b = max(sub, (tile_b // sub) * sub)
    num_tiles = pl.cdiv(b, tile_b)

    # MXU row-sum only when the class axis is lane-aligned (no padding-lane
    # ambiguity in the matmul) and small enough that the kernel would
    # otherwise be XLU-bound rather than HBM-bound.
    use_mxu_rowsum = (c % 128 == 0) and (c <= 1024)

    labels_2d = glabel.astype(jnp.int32).reshape(b, 1)
    kernel = functools.partial(_acol_loss_kernel, total_b=b, tile_b=tile_b,
                               use_mxu_rowsum=use_mxu_rowsum)

    # Deeper pipelining when per-step streamed bytes are small.
    step_bytes = 2 * tile_b * c * itemsize
    want_buffers = 3 if (step_bytes < (1 << 20) and num_tiles >= 3) else 2

    def _logits_spec(n_buffers):
        if n_buffers > 2:
            try:
                return pl.BlockSpec((tile_b, c), lambda i: (i, 0),
                                    pipeline_mode=pl.Buffered(n_buffers))
            except Exception:
                pass
        return pl.BlockSpec((tile_b, c), lambda i: (i, 0))

    def _run(n_buffers):
        return pl.pallas_call(
            kernel,
            out_shape=jax.ShapeDtypeStruct((num_tiles, 8, 128), jnp.float32),
            grid=(num_tiles,),
            in_specs=[
                pl.BlockSpec((tile_b, 1), lambda i: (i, 0)),   # labels
                _logits_spec(n_buffers),                       # branch-A logits
                _logits_spec(n_buffers),                       # branch-B logits
            ],
            out_specs=pl.BlockSpec((1, 8, 128), lambda i: (i, 0, 0)),
            compiler_params=pltpu.CompilerParams(
                dimension_semantics=("parallel",),
                vmem_limit_bytes=hw["vmem_limit_bytes"],
            ),
            cost_estimate=pl.CostEstimate(
                flops=12 * b * c,
                transcendentals=2 * b * c,
                bytes_accessed=(2 * b * c * itemsize + b * 4
                                + num_tiles * 8 * 128 * 4),
            ),
        )(labels_2d, logits_a, logits_b)

    try:
        partials = _run(want_buffers)
    except Exception:
        if want_buffers <= 2:
            raise
        partials = _run(2)      # fall back to default double buffering

    # Tiny final reduction over per-tile partials, then the 1/B of the mean.
    return jnp.sum(partials[:, 0, 0]) / jnp.float32(b)


class AcolLossJax:
    """Thin wrapper mirroring the epoch-gating logic of _ElementaryLoss."""

    def __init__(self, lambda_=1.0, start_epoch=None, end_epoch=None):
        self.lambda_ = lambda_
        if end_epoch == -1:
            end_epoch = None
        self.start_epoch = start_epoch
        self.end_epoch = end_epoch
        self.c_epoch = 0

    def is_on(self, _epoch=None):
        c_epoch = self.c_epoch if _epoch is None else _epoch
        if self.start_epoch is None and self.end_epoch is None:
            return True
        if isinstance(self.start_epoch, int) and isinstance(self.end_epoch, int):
            return self.start_epoch <= c_epoch <= self.end_epoch
        if self.start_epoch is None and isinstance(self.end_epoch, int):
            return c_epoch <= self.end_epoch
        if isinstance(self.start_epoch, int) and self.end_epoch is None:
            return c_epoch >= self.start_epoch
        return False

    def __call__(self, epoch, logits_dict, glabel):
        self.c_epoch = epoch
        if not self.is_on():
            return jnp.zeros((), jnp.float32)
        return acol_loss_pallas(logits_dict["logits"], logits_dict["logit_b"],
                                glabel)


def _reference_loss(logits_a, logits_b, glabel):
    """Pure-JAX reference of torch CrossEntropyLoss (mean) x 2."""
    def ce(logits):
        logp = jax.nn.log_softmax(logits.astype(jnp.float32), axis=-1)
        picked = jnp.take_along_axis(logp, glabel[:, None], axis=-1)[:, 0]
        return -jnp.mean(picked)
    return ce(logits_a) + ce(logits_b)


if __name__ == "__main__":
    key = jax.random.PRNGKey(0)
    k1, k2, k3 = jax.random.split(key, 3)

    # Small shapes consistent with the module's [B, C] classification logits.
    B, C = 8, 16
    logits_a = jax.random.normal(k1, (B, C), dtype=jnp.float32)
    logits_b = jax.random.normal(k2, (B, C), dtype=jnp.float32)
    glabel = jax.random.randint(k3, (B,), 0, C, dtype=jnp.int32)

    loss_mod = AcolLossJax()
    out = loss_mod(0, {"logits": logits_a, "logit_b": logits_b}, glabel)
    out = jax.block_until_ready(out)
    ref = _reference_loss(logits_a, logits_b, glabel)
    assert jnp.allclose(out, ref, atol=1e-5, rtol=1e-5), (out, ref)

    # Multi-tile grid, remainder-row masking, bf16 streaming, deep pipelining.
    B2, C2 = 300, 37
    ka, kb, kc = jax.random.split(jax.random.PRNGKey(1), 3)
    la = jax.random.normal(ka, (B2, C2), dtype=jnp.bfloat16)
    lb = jax.random.normal(kb, (B2, C2), dtype=jnp.bfloat16)
    gl = jax.random.randint(kc, (B2,), 0, C2, dtype=jnp.int32)
    out2 = jax.block_until_ready(acol_loss_pallas(la, lb, gl, tile_b=64))
    ref2 = _reference_loss(la, lb, gl)
    assert jnp.allclose(out2, ref2, atol=2e-4, rtol=2e-4), (out2, ref2)

    # Lane-aligned class axis -> exercises the MXU row-sum path.
    B3, C3 = 128, 256
    kd, ke, kf = jax.random.split(jax.random.PRNGKey(2), 3)
    lc = jax.random.normal(kd, (B3, C3), dtype=jnp.float32)
    ld = jax.random.normal(ke, (B3, C3), dtype=jnp.float32)
    gl3 = jax.random.randint(kf, (B3,), 0, C3, dtype=jnp.int32)
    out3 = jax.block_until_ready(acol_loss_pallas(lc, ld, gl3, tile_b=64))
    ref3 = _reference_loss(lc, ld, gl3)
    assert jnp.allclose(out3, ref3, atol=5e-4, rtol=5e-4), (out3, ref3)

    print("KERNEL_OK")
</pallas_src>

<mosaic_0001>
module attributes {stable_mosaic.version = 11 : i64} {
  func.func @_acol_loss_kernel(%arg0: i32, %arg1: memref<8x1xi32, #tpu.memory_space<vmem>>, %arg2: memref<8x16xf32, #tpu.memory_space<vmem>>, %arg3: memref<8x16xf32, #tpu.memory_space<vmem>>, %arg4: memref<1x8x128xf32, #tpu.memory_space<vmem>>) attributes {dimension_semantics = [#tpu.dimension_semantics<parallel>], iteration_bounds = array<i64: 1>, scalar_prefetch = 0 : i64, scratch_operands = 0 : i64, tpu.core_type = #tpu.core_type<tc>, window_params = [{transform_indices = @transform_0, window_bounds = array<i64: 8, 1>}, {transform_indices = @transform_1, window_bounds = array<i64: 8, 16>}, {transform_indices = @transform_2, window_bounds = array<i64: 8, 16>}, {transform_indices = @transform_3, window_bounds = array<i64: 1, 8, 128>}]} {
    %c0 = arith.constant 0 : index
    %c0_0 = arith.constant 0 : index
    %0 = vector.load %arg1[%c0, %c0_0] : memref<8x1xi32, #tpu.memory_space<vmem>>, vector<8x1xi32>
    %c8_i32 = arith.constant 8 : i32
    %1 = arith.muli %arg0, %c8_i32 : i32
    %2 = tpu.iota {dimensions = array<i32: 0>} : vector<8x1xi32>
    %3 = vector.broadcast %1 : i32 to vector<8x1xi32>
    %4 = arith.addi %3, %2 : vector<8x1xi32>
    %c8_i32_1 = arith.constant 8 : i32
    %5 = vector.broadcast %c8_i32_1 : i32 to vector<8x1xi32>
    %6 = arith.cmpi slt, %4, %5 : vector<8x1xi32>
    %c0_2 = arith.constant 0 : index
    %c0_3 = arith.constant 0 : index
    %7 = vector.load %arg2[%c0_2, %c0_3] : memref<8x16xf32, #tpu.memory_space<vmem>>, vector<8x16xf32>
    %c0_4 = arith.constant 0 : index
    %c0_5 = arith.constant 0 : index
    %8 = vector.load %arg3[%c0_4, %c0_5] : memref<8x16xf32, #tpu.memory_space<vmem>>, vector<8x16xf32>
    %cst = arith.constant dense<0xFF800000> : vector<8xf32>
    %9 = vector.multi_reduction <maximumf>, %7, %cst [1] : vector<8x16xf32> to vector<8xf32>
    %10 = vector.shape_cast %9 : vector<8xf32> to vector<8x1xf32>
    %11 = vector.broadcast %10 : vector<8x1xf32> to vector<8x16xf32>
    %12 = arith.subf %7, %11 : vector<8x16xf32>
    %13 = math.exp %12 : vector<8x16xf32>
    %cst_6 = arith.constant dense<0.000000e+00> : vector<8xf32>
    %14 = vector.multi_reduction <add>, %13, %cst_6 [1] : vector<8x16xf32> to vector<8xf32>
    %15 = vector.shape_cast %14 : vector<8xf32> to vector<8x1xf32>
    %16 = math.log %15 : vector<8x1xf32>
    %17 = arith.addf %10, %16 : vector<8x1xf32>
    %cst_7 = arith.constant dense<0xFF800000> : vector<8xf32>
    %18 = vector.multi_reduction <maximumf>, %8, %cst_7 [1] : vector<8x16xf32> to vector<8xf32>
    %19 = vector.shape_cast %18 : vector<8xf32> to vector<8x1xf32>
    %20 = vector.broadcast %19 : vector<8x1xf32> to vector<8x16xf32>
    %21 = arith.subf %8, %20 : vector<8x16xf32>
    %22 = math.exp %21 : vector<8x16xf32>
    %cst_8 = arith.constant dense<0.000000e+00> : vector<8xf32>
    %23 = vector.multi_reduction <add>, %22, %cst_8 [1] : vector<8x16xf32> to vector<8xf32>
    %24 = vector.shape_cast %23 : vector<8xf32> to vector<8x1xf32>
    %25 = math.log %24 : vector<8x1xf32>
    %26 = arith.addf %19, %25 : vector<8x1xf32>
    %27 = arith.addf %17, %26 : vector<8x1xf32>
    %cst_9 = arith.constant 0.000000e+00 : f32
    %28 = vector.broadcast %cst_9 : f32 to vector<8x1xf32>
    %29 = arith.select %6, %27, %28 : vector<8x1xi1>, vector<8x1xf32>
    %30 = vector.shape_cast %29 : vector<8x1xf32> to vector<1x8x1xf32>
    %cst_10 = arith.constant dense<0.000000e+00> : vector<1xf32>
    %31 = vector.multi_reduction <add>, %30, %cst_10 [1, 2] : vector<1x8x1xf32> to vector<1xf32>
    %32 = vector.shape_cast %31 : vector<1xf32> to vector<1x1x1xf32>
    %33 = vector.extract %32[0, 0, 0] : f32 from vector<1x1x1xf32>
    %34 = tpu.iota {dimensions = array<i32: 1>} : vector<8x16xi32>
    %35 = vector.broadcast %0 : vector<8x1xi32> to vector<8x16xi32>
    %36 = arith.cmpi eq, %34, %35 : vector<8x16xi32>
    %37 = vector.broadcast %6 : vector<8x1xi1> to vector<8x16xi1>
    %38 = arith.andi %36, %37 : vector<8x16xi1>
    %39 = arith.addf %7, %8 : vector<8x16xf32>
    %cst_11 = arith.constant 0.000000e+00 : f32
    %40 = vector.broadcast %cst_11 : f32 to vector<8x16xf32>
    %41 = arith.select %38, %39, %40 : vector<8x16xi1>, vector<8x16xf32>
    %42 = vector.shape_cast %41 : vector<8x16xf32> to vector<1x8x16xf32>
    %cst_12 = arith.constant dense<0.000000e+00> : vector<1xf32>
    %43 = vector.multi_reduction <add>, %42, %cst_12 [1, 2] : vector<1x8x16xf32> to vector<1xf32>
    %44 = vector.shape_cast %43 : vector<1xf32> to vector<1x1x1xf32>
    %45 = vector.extract %44[0, 0, 0] : f32 from vector<1x1x1xf32>
    %46 = arith.subf %33, %45 : f32
    %47 = vector.broadcast %46 : f32 to vector<1x8x128xf32>
    %c0_13 = arith.constant 0 : index
    %c0_14 = arith.constant 0 : index
    %c0_15 = arith.constant 0 : index
    %48 = vector.load %arg4[%c0_13, %c0_14, %c0_15] : memref<1x8x128xf32, #tpu.memory_space<vmem>>, vector<1x8x128xf32>
    tpu.vector_store %arg4[%c0_13, %c0_14, %c0_15], %47 {strides = array<i32>} : memref<1x8x128xf32, #tpu.memory_space<vmem>>, vector<1x8x128xf32>,
    return
  }
  func.func @transform_0(%arg0: i32) -> (i32, i32) {
    %c0_i32 = arith.constant 0 : i32
    %c0_i32_0 = arith.constant 0 : i32
    return %arg0, %c0_i32 : i32, i32
  }
  func.func @transform_1(%arg0: i32) -> (i32, i32) {
    %c0_i32 = arith.constant 0 : i32
    %c0_i32_0 = arith.constant 0 : i32
    return %arg0, %c0_i32 : i32, i32
  }
  func.func @transform_2(%arg0: i32) -> (i32, i32) {
    %c0_i32 = arith.constant 0 : i32
    %c0_i32_0 = arith.constant 0 : i32
    return %arg0, %c0_i32 : i32, i32
  }
  func.func @transform_3(%arg0: i32) -> (i32, i32, i32) {
    %c0_i32 = arith.constant 0 : i32
    %c0_i32_0 = arith.constant 0 : i32
    %c0_i32_1 = arith.constant 0 : i32
    return %arg0, %c0_i32, %c0_i32_0 : i32, i32, i32
  }
}

</mosaic_0001>

<bundles_post_ra>
// kernel: tpu_custom_call.1
= control target key start
LH: loop header
LB: loop body
LE: loop exit
PB: predicated region body
PF: predicated region fallthrough
CT: control target
= control target key end

     0   :  { %8 = vsyncpa [#allocation3], 0  ;;  %s327_s0 = inlined_call_operand.hbm [shape: s32[8,1], index: 0, kind: input, shape index: {}]   ;;  %s328_s1 = inlined_call_operand.hbm [shape: f32[8,16], index: 1, kind: input, shape index: {}]   ;;  %s329_s2 = inlined_call_operand.hbm [shape: f32[8,16], index: 2, kind: input, shape index: {}]   ;;  %s330_s3 = inlined_call_operand.hbm [shape: f32[1,8,128], index: 3, kind: output, shape index: {}]  }
   0x1   :  { %9 = vsyncpa [#allocation6], 0 }
   0x2   :  { %10 = vsyncpa [#allocation4], 0  ;;  %s249_s12 = smov [#allocation5]   ;;  %s250_s14 = smov [#allocation2]  }
   0x3   :  { %s27_s13 = sshll.u32 %s249_s12, 4  ;;  %s17_s15 = sshll.u32 %s250_s14, 4  ;;  %s28_s13 = int_to_ptr.vmem [resolvable:$true] %s27_s13  ;;  %s18_s15 = int_to_ptr.vmem [resolvable:$true] %s17_s15 }
   0x4   :  { %s155_s18 = scalar_lea.hbm %s328_s1, 128 }
   0x5   :  { %p156_p0 = scmp.ne.s32.totalorder %s328_s1, %s155_s18  ;;  %p159_p1 = scmp.lt.u32.totalorder %s155_s18, %s328_s1 }
   0x7   :  { %p161_p2 = pnand %p159_p1, %p156_p0 }
   0x9   :  { %164 = shalt.err (!%p161_p2)
}
   0xa   :  { %s165_s23 = scalar_lea.vmem %s28_s13, 128  ;;  %p170_p4 = scmp.lt.s32.totalorder %s28_s13, %s28_s13 }
   0xb   :  { %p166_p3 = scmp.ne.s32.totalorder %s28_s13, %s165_s23  ;;  %p171_p5 = scmp.lt.s32.totalorder %s165_s23, %s165_s23 }
   0xd   :  { %p172_p6 = por %p171_p5, %p170_p4 }
   0xf   :  { %p173_p7 = pnand %p172_p6, %p166_p3 }
  0x11   :  { %176 = shalt.err (!%p173_p7)
}
  0x12   :  { %30 = dma.hbm_to_vmem [thread:$0]  %s328_s1, 128, %s28_s13, [#allocation6]  }
  0x13   :  { %s177_s28 = scalar_lea.hbm %s327_s0, 128 }
  0x14   :  { %p178_p8 = scmp.ne.s32.totalorder %s327_s0, %s177_s28  ;;  %p181_p9 = scmp.lt.u32.totalorder %s177_s28, %s327_s0 }
  0x16   :  { %p183_p10 = pnand %p181_p9, %p178_p8 }
  0x18   :  { %186 = shalt.err (!%p183_p10)
}
  0x19   :  { %s187_s6 = scalar_lea.vmem %s18_s15, 128  ;;  %p192_p12 = scmp.lt.s32.totalorder %s18_s15, %s18_s15 }
  0x1a   :  { %p188_p11 = scmp.ne.s32.totalorder %s18_s15, %s187_s6  ;;  %p193_p13 = scmp.lt.s32.totalorder %s187_s6, %s187_s6 }
  0x1c   :  { %p194_p0 = por %p193_p13, %p192_p12 }
  0x1e   :  { %p195_p1 = pnand %p194_p0, %p188_p11 }
  0x20   :  { %198 = shalt.err (!%p195_p1)
}
  0x21   :  { %20 = dma.hbm_to_vmem [thread:$0]  %s327_s0, 128, %s18_s15, [#allocation3]  }
  0x22   :  { %s251_s8 = smov [#allocation7]   ;;  %s199_s12 = scalar_lea.hbm %s329_s2, 128 }
  0x23   :  { %s37_s9 = sshll.u32 %s251_s8, 4  ;;  %p200_p2 = scmp.ne.s32.totalorder %s329_s2, %s199_s12  ;;  %s38_s9 = int_to_ptr.vmem [resolvable:$true] %s37_s9 }
  0x24   :  { %p203_p3 = scmp.lt.u32.totalorder %s199_s12, %s329_s2 }
  0x26   :  { %p205_p4 = pnand %p203_p3, %p200_p2 }
  0x28   :  { %208 = shalt.err (!%p205_p4)
}
  0x29   :  { %s209_s18 = scalar_lea.vmem %s38_s9, 128  ;;  %p214_p6 = scmp.lt.s32.totalorder %s38_s9, %s38_s9 }
  0x2a   :  { %p210_p5 = scmp.ne.s32.totalorder %s38_s9, %s209_s18  ;;  %p215_p7 = scmp.lt.s32.totalorder %s209_s18, %s209_s18 }
  0x2c   :  { %p216_p8 = por %p215_p7, %p214_p6 }
  0x2e   :  { %p217_p9 = pnand %p216_p8, %p210_p5 }
  0x30   :  { %220 = shalt.err (!%p217_p9)
}
  0x31   :  { %40 = dma.hbm_to_vmem [thread:$0]  %s329_s2, 128, %s38_s9, [#allocation6]  }
  0x32   :  { %243 = dma.done.wait [#allocation3], 128  }
  0x33   :  { %244 = vsyncadd [#allocation3], 4294967168 }
  0x34   :  { %245 = dma.done.wait [#allocation6], 256  }
  0x35   :  { %246 = vsyncadd [#allocation6], 4294967040  ;;  %vm59_vm0 = vcmask 130048   ;;  %v57_v0 = vld [vmem:[#allocation5] sm:$0xff]  ;;  %v58_v1 = vld [vmem:[#allocation7] sm:$0xff]  ;;  %v252_v5 = vmov 0   ;;  %v97_v18 = vlaneseq }
  0x36   :  { %v60_v2 = vsel %vm59_vm0, %v57_v0, -inf  ;;  %v72_v3 = vsel %vm59_vm0, %v58_v1, -inf  ;;  %v50_v4 = vld [vmem:[#allocation2] sm:$0xff]  ;;  %146 = vset.pattern.permute.xlu0 %v252_v5  ;;  %v106_v25 = vadd.f32 %v58_v1, %v57_v0  ;;  %vm86_vm2 = vcmask 7168   ;;  %s253_s19 = smov [#allocation8]  }
  0x37   :  { %61 = vmax.xlane.f32.xlu0 %v60_v2  ;;  %v98_v21 = vand.u32 127, %v97_v18  ;;  %s127_s20 = sshll.u32 %s253_s19, 4  ;;  %s128_s20 = int_to_ptr.vmem [resolvable:$true] %s127_s20 }
  0x38   :  { %s221_s23 = scalar_lea.vmem %s128_s20, 128  ;;  %p226_p11 = scmp.lt.s32.totalorder %s128_s20, %s128_s20 }
  0x39   :  { %p222_p10 = scmp.ne.s32.totalorder %s128_s20, %s221_s23  ;;  %p227_p12 = scmp.lt.s32.totalorder %s221_s23, %s221_s23 }
  0x3b   :  { %73 = vmax.xlane.f32.xlu0 %v72_v3  ;;  %p228_p13 = por %p227_p12, %p226_p11 }
  0x3d   :  { %p229_p0 = pnand %p228_p13, %p222_p10 }
  0x51   :  { %100 = vperm.xlu0 %146, %v50_v4  }
  0xc4   :  { %v62_v6 = vpop.xlane.xlu0 %61 }
  0xc5   :  { %v63_v7 = vsub.f32 %v57_v0, %v62_v6 }
  0xc7   :  { %v64_v8 = vmul.f32 1.442695, %v63_v7 }
  0xc8   :  { %v74_v9 = vpop.xlane.xlu0 %73 }
  0xc9   :  { %147 = vpow2.f32 %v64_v8  ;;  %v75_v10 = vsub.f32 %v58_v1, %v74_v9 }
  0xcb   :  { %v76_v11 = vmul.f32 1.442695, %v75_v10 }
  0xcd   :  { %149 = vpow2.f32 %v76_v11 }
  0xd0   :  { %v101_v23 = vpop.permute.xlu0 %100 }
  0xd1   :  { %vm102_vm1 = vcmp.eq.s32.totalorder %v98_v21, %v101_v23 }
  0xd2   :  { %v107_v29 = vsel %vm102_vm1, %v106_v25, 0.0 }
  0xd3   :  { %v148_v12 = vpop.eup %147  ;;  %v108_v31 = vsel %vm59_vm0, %v107_v29, 0.0 }
  0xd4   :  { %v66_v13 = vsel %vm59_vm0, %v148_v12, 0.0 }
  0xd5   :  { %67 = vadd.xlane.f32.xlu1 %v66_v13 }
  0xd7   :  { %v150_v14 = vpop.eup %149 }
  0xd8   :  { %v78_v15 = vsel %vm59_vm0, %v150_v14, 0.0 }
  0xd9   :  { %79 = vadd.xlane.f32.xlu1 %v78_v15 }
 0x162   :  { %v68_v16 = vpop.xlane.xlu1 %67 }
 0x163   :  { %151 = vlog2.f32 %v68_v16 }
 0x166   :  { %v80_v17 = vpop.xlane.xlu1 %79 }
 0x167   :  { %153 = vlog2.f32 %v80_v17 }
 0x16d   :  { %v152_v19 = vpop.eup %151 }
 0x16e   :  { %v70_v20 = vmul.f32 0.6931472, %v152_v19 }
 0x170   :  { %v71_v26 = vadd.f32 %v70_v20, %v62_v6 }
 0x171   :  { %v154_v22 = vpop.eup %153 }
 0x172   :  { %v82_v24 = vmul.f32 0.6931472, %v154_v22 }
 0x174   :  { %v83_v27 = vadd.f32 %v82_v24, %v74_v9 }
 0x176   :  { %v84_v28 = vadd.f32 %v83_v27, %v71_v26 }
 0x178   :  { %v87_v30 = vsel %vm86_vm2, %v84_v28, 0.0 }
 0x179   :  { %88 = vadd.xlane.f32.xlu1 %v87_v30 }
 0x17d   :  { %109 = vadd.xlane.f32.xlu1 %v108_v31 }
 0x206   :  { %v89_v32 = vpop.xlane.xlu1 %88 }
 0x207   :  { %v90_v33 = vrot.slane %v89_v32, 4 }
 0x209   :  { %v91_v34 = vadd.f32 %v90_v33, %v89_v32 }
 0x20a   :  { %v110_v35 = vpop.xlane.xlu1 %109 }
 0x20b   :  { %v92_v36 = vrot.slane %v91_v34, 2  ;;  %v111_v37 = vrot.slane %v110_v35, 4 }
 0x20d   :  { %v112_v38 = vadd.f32 %v111_v37, %v110_v35  ;;  %v93_v39 = vadd.f32 %v92_v36, %v91_v34 }
 0x20f   :  { %v113_v40 = vrot.slane %v112_v38, 2  ;;  %v94_v41 = vrot.slane %v93_v39, 1 }
 0x211   :  { %v114_v42 = vadd.f32 %v113_v40, %v112_v38  ;;  %v95_v43 = vadd.f32 %v94_v41, %v93_v39 }
 0x213   :  { %137 = vpush %v95_v43  ;;  %v115_v44 = vrot.slane %v114_v42, 1 }
 0x215   :  { %v116_v45 = vadd.f32 %v115_v44, %v114_v42 }
 0x217   :  { %139 = vpush %v116_v45 }
 0x244   :  { %s138_s2 = spop %137 }
 0x248   :  { %s140_s21 = spop %139 }
 0x249   :  { %s118_s22 = ssub.f32 %s138_s2, %s140_s21 }
 0x24b   :  { %v119_v46 = vstv %s118_s22 }
 0x24c   :  { %120 = vst [vmem:[#allocation8] sm:$0xff] %v119_v46 }
 0x24d   :  { %232 = shalt.err (!%p229_p0)
}
 0x24e   :  { %s233_s26 = scalar_lea.hbm %s330_s3, 128 }
 0x24f   :  { %p234_p1 = scmp.ne.s32.totalorder %s330_s3, %s233_s26  ;;  %p237_p2 = scmp.lt.u32.totalorder %s233_s26, %s330_s3 }
 0x251   :  { %p239_p3 = pnand %p237_p2, %p234_p1 }
 0x253   :  { %242 = shalt.err (!%p239_p3)
}
 0x254   :  { %130 = dma.vmem_to_hbm [thread:$0]  %s128_s20, 128, %s330_s3, [#allocation4]  }
 0x255   :  { %247 = dma.done.wait [#allocation4], 128  }
 0x256   :  { %248 = vsyncadd [#allocation4], 4294967168 }
 0x257   :  { %134 = vsyncpa [#allocation3], 1 }
 0x258   :  { %135 = vsyncpa [#allocation6], 1 }
 0x259   :  { %136 = vsyncpa [#allocation4], 1 }

</bundles_post_ra>
